<compile_context>
chip_gen: v7x
topology: tpu7x:2x2x1
jax: 0.10.0
libtpu: 0.0.40
codegen_flags: <defaults>
</compile_context>

<pallas_src>
import functools

import jax
import jax.numpy as jnp
from jax import lax
from jax.experimental import pallas as pl
from jax.experimental.pallas import tpu as pltpu


def _round_up(x, m):
    return (x + m - 1) // m * m


def _cdiv(a, b):
    return (a + b - 1) // b


# ----------------------------------------------------------------------------
# Fused LayerNorm + weighted squared-error partial reduction
# ----------------------------------------------------------------------------
def _ln_mse_kernel(s_ref, t_ref, w_ref, o_ref, *, eps, n_rows, ragged):
    # s_ref, t_ref : (TB, E) native dtype (bf16/f32) -- upcast to f32 on the VPU (free vs HBM)
    # w_ref        : (1, TB) f32  lane-dense per-row weights (mask; 0 drops a row)
    # o_ref        : (1, 1, E) f32 per-block, per-lane partial SSE (lane-dense output)
    s = s_ref[...].astype(jnp.float32)
    t = t_ref[...].astype(jnp.float32)
    tb = s.shape[0]
    inv_e = 1.0 / s.shape[-1]  # static

    def _ln(x):  # torch.nn.LayerNorm with weight == 1; bias cancels in the s - t difference
        mu = jnp.sum(x, axis=-1, keepdims=True) * inv_e
        xc = x - mu
        var = jnp.sum(xc * xc, axis=-1, keepdims=True) * inv_e
        return xc * lax.rsqrt(var + eps)

    d = _ln(s) - _ln(t)                        # (TB, E)
    dsq = d * d
    w = w_ref[...]                             # (1, TB)
    if ragged:
        # The last block reads past row n_rows (no jnp.pad in the wrapper): zero BOTH the
        # squared diff (garbage rows can produce NaN/Inf through the normalization) and the
        # weight (garbage w) BEFORE the reduction -- 0-weight * NaN would still poison it.
        row0 = pl.program_id(0) * tb
        valid_rows = (lax.broadcasted_iota(jnp.int32, (tb, 1), 0) + row0) < n_rows
        valid_cols = (lax.broadcasted_iota(jnp.int32, (1, tb), 1) + row0) < n_rows
        dsq = jnp.where(valid_rows, dsq, 0.0)
        w = jnp.where(valid_cols, w, 0.0)
    # Weighted row-reduction on the otherwise-idle MXU: (1, TB) @ (TB, E) -> (1, E);
    # frees VPU/XLU slots and avoids the cross-sublane axis-0 reduction.
    acc = jnp.dot(w, dsq, precision=lax.Precision.HIGHEST,
                  preferred_element_type=jnp.float32)
    o_ref[...] = acc[None]                     # (1, 1, E)


def ln_mse_sse(s_rows, t_rows, w_rows, *, eps=1e-5, tb_max=2048, min_grid=4,
               buffer_count=None):
    """sum_r w_r * || LN(s_r) - LN(t_r) ||^2 over rows of length E.

    s_rows, t_rows: [R, E] any float dtype (fed as-is -- no wrapper upcast);
    w_rows: [R] (or [1, R]) float per-row weights.  Returns an f32 scalar.
    buffer_count: optional pipeline depth for the two row streams (e.g. 3 on v5e);
    default is the standard double-buffering.
    """
    R, E = s_rows.shape
    assert t_rows.shape == (R, E), (s_rows.shape, t_rows.shape)
    w_row = w_rows.astype(jnp.float32).reshape(1, R)

    # Row-block size.  The multi-block path uses a multiple of 128 rows so the lane-dense
    # (1, tb) weight block satisfies the (8,128) rule on every grid step and bf16 rows pack
    # sublanes cleanly; the single-block path (tb == R) is always layout-legal.
    itemsize = max(jnp.dtype(s_rows.dtype).itemsize, jnp.dtype(t_rows.dtype).itemsize)
    # ~2 MiB per input block => 2 inputs x 2 buffers stays well under the scoped-VMEM
    # defaults (16 MiB v5e, 32 MiB v6e / v7x; note v7x physical VMEM is only 64 MiB).
    tb_cap = max(128, min(tb_max, ((1 << 21) // (E * itemsize)) // 128 * 128))
    if R > 128:
        # Aim for >= min_grid grid steps so the "parallel" axis can shard across the two
        # TensorCores of a v7x chip and the DMA pipeline has something to overlap.
        tb = min(tb_cap, _round_up(_cdiv(R, min_grid), 128))
    else:
        tb = R
    grid = _cdiv(R, tb)
    ragged = (R % tb) != 0

    def _row_spec():
        if buffer_count is None:
            return pl.BlockSpec((tb, E), lambda i: (i, 0))
        return pl.BlockSpec((tb, E), lambda i: (i, 0),
                            pipeline_mode=pl.Buffered(buffer_count))

    partials = pl.pallas_call(
        functools.partial(_ln_mse_kernel, eps=float(eps), n_rows=R, ragged=ragged),
        out_shape=jax.ShapeDtypeStruct((grid, 1, E), jnp.float32),
        grid=(grid,),
        in_specs=[_row_spec(), _row_spec(),
                  pl.BlockSpec((1, tb), lambda i: (0, i))],
        out_specs=pl.BlockSpec((1, 1, E), lambda i: (i, 0, 0)),
        compiler_params=pltpu.CompilerParams(dimension_semantics=("parallel",)),
    )(s_rows, t_rows, w_row)     # native dtypes go straight in; upcast happens in-kernel
    return jnp.sum(partials)


# ----------------------------------------------------------------------------
# Module wrapper (mirrors SequenceHintDropoutLoss.forward / feat_loss)
# ----------------------------------------------------------------------------
class SequenceHintDropoutLossPallas:
    def __init__(self, loss_cfg, teacher_tasks, **kwargs):
        self.num_teachers = len(teacher_tasks)
        amg_cfg = loss_cfg["seq_hint_dropout"]
        self.emb_dim = int(amg_cfg["emb_dim"])
        self.eps = 1e-5
        if not amg_cfg.get("use_layer_norm", True):
            # TODO(synk): ChannelNorm(dim=(0,1)) variant not implemented; LayerNorm path only.
            raise NotImplementedError("ChannelNorm variant not implemented in the Pallas port")
        # nn.LayerNorm(emb_dim): the bias cancels in the student-teacher difference and the
        # default weight is all-ones, so no affine parameter is streamed into the kernel.
        # TODO(synk): if a trained non-unit LayerNorm weight must be supported, pass it back
        # as a small (1, E) VMEM-resident input and multiply `d` by it in the kernel.

    def feat_loss(self, student_seq, teacher_seq):
        # student_seq: [T*S, B, E]; teacher_seq: list of T arrays [S, B, E].
        # One kernel call per teacher chunk (no teacher concatenation); each term is the
        # per-chunk mean, exactly like F.mse_loss per chunk in the reference.
        t_count = self.num_teachers
        s_len = student_seq.shape[0] // t_count
        e = student_seq.shape[-1]
        loss = jnp.float32(0.0)
        for t in range(t_count):
            # TODO(synk): this leading-axis chunk slice may still materialize a copy; fold the
            # chunk offset into the student BlockSpec index_map when (s_len*B) % tb == 0.
            s_chunk = student_seq[t * s_len:(t + 1) * s_len]
            t_chunk = teacher_seq[t]
            r = s_chunk.shape[0] * s_chunk.shape[1]
            w = jnp.ones((r,), jnp.float32)
            sse = ln_mse_sse(s_chunk.reshape(r, e), t_chunk.reshape(-1, e), w, eps=self.eps)
            loss = loss + sse / (r * e)
        return loss

    def __call__(self, output_s, output_t, student_seq, teacher_seq, **kwargs):
        assert "mask" in output_s, "Sequence amalgamation loss requires `return_mask = True`"
        mask_pad = output_s["mask"]                              # [B, H, W] bool, True = padded
        b = mask_pad.shape[0]
        keep = jnp.logical_not(mask_pad.reshape(b, -1).T)        # [N, B] True = keep (un-permuted)

        loss_dict = {}
        loss_dict["seq_amg_hint_loss.feat"] = self.feat_loss(
            output_s["feat"], [t["feat"] for t in output_t])

        permute = output_s["permute"]                            # [B, N] int
        # Reference pairs student token n with teacher token permute[b, n] under the permuted
        # mask.  Equivalently (m = permute[b, n]): pair teacher token m with student token
        # inv_permute[b, m] under the UN-permuted mask.  This keeps the teacher chunks
        # untouched (no concat, no gather) and needs only ONE gather, on the student.
        inv_permute = jnp.argsort(permute, axis=1).astype(jnp.int32)   # [B, N]
        w_all = keep.astype(jnp.float32)                         # [N, B]
        n_keep = jnp.sum(w_all)                                  # == permuted-mask count (bijection)
        e = self.emb_dim

        for layer_name, seq_s in student_seq.items():            # seq_s: [N, B, E]
            sse = jnp.float32(0.0)
            off = 0
            for t_dict in teacher_seq:
                t_chunk = t_dict[layer_name]                     # [S_t, B, E] used directly
                s_t = t_chunk.shape[0]
                idx = inv_permute[:, off:off + s_t].T            # [S_t, B]
                # LayerNorm is per-row, so gather-then-norm == norm-then-gather (reference).
                # TODO(synk): take_along_axis materializes the gathered student rows; could
                # become an in-kernel per-row DMA gather (PrefetchScalarGridSpec) instead.
                s_chunk = jnp.take_along_axis(seq_s, idx[..., None], axis=0)   # [S_t, B, E]
                w_chunk = w_all[off:off + s_t]                   # [S_t, B]
                sse = sse + ln_mse_sse(
                    s_chunk.reshape(-1, e), t_chunk.reshape(-1, e),
                    w_chunk.reshape(-1), eps=self.eps)
                off += s_t
            # NOTE: n_keep == 0 (every token masked) yields NaN, matching the PyTorch reference.
            loss_dict[f"seq_amg_hint_loss.{layer_name}"] = sse / (n_keep * e)
        return loss_dict


# ----------------------------------------------------------------------------
if __name__ == "__main__":
    key = jax.random.PRNGKey(0)
    B, T, S, E = 2, 2, 32, 128          # batch, teachers, tokens/teacher, emb_dim
    H = W = 8                           # H*W == T*S tokens in the amalgamated sequence
    N = T * S
    act_dtype = jnp.bfloat16            # feed native low-precision activations (no wrapper upcast)
    layer_names = ["layer_0", "layer_1"]
    teacher_tasks = [[0, 1, 2, 3], [4, 5, 6, 7]]
    loss_cfg = {"seq_hint_dropout": {"emb_dim": E, "use_layer_norm": True}}

    keys = jax.random.split(key, 20)
    feat_s = jax.random.normal(keys[0], (N, B, E), jnp.float32).astype(act_dtype)
    output_t = []
    for t in range(T):
        output_t.append(
            {"feat": jax.random.normal(keys[1 + t], (S, B, E), jnp.float32).astype(act_dtype)})
    mask_pad = jax.random.bernoulli(keys[4], 0.25, (B, H, W))    # True = padded token
    permute = jnp.stack(
        [jax.random.permutation(k, N) for k in jax.random.split(keys[5], B)], axis=0
    ).astype(jnp.int32)                                          # [B, N]
    output_s = {"feat": feat_s, "mask": mask_pad, "permute": permute}

    student_seq = {}
    teacher_seq = [dict() for _ in range(T)]
    for li, ln_name in enumerate(layer_names):
        student_seq[ln_name] = jax.random.normal(
            keys[6 + li], (N, B, E), jnp.float32).astype(act_dtype)
        for t in range(T):
            teacher_seq[t][ln_name] = jax.random.normal(
                keys[8 + li * T + t], (S, B, E), jnp.float32).astype(act_dtype)

    module = SequenceHintDropoutLossPallas(loss_cfg, teacher_tasks)
    out = module(output_s, output_t, student_seq, teacher_seq)
    out = jax.block_until_ready(out)

    # --- correctness checks against a pure-JAX reference (same bf16 values, math in f32) ---
    def _ref_ln(x, eps=1e-5):
        x = x.astype(jnp.float32)
        mu = jnp.mean(x, -1, keepdims=True)
        var = jnp.mean((x - mu) ** 2, -1, keepdims=True)
        return (x - mu) / jnp.sqrt(var + eps)

    chunks = jnp.split(feat_s.astype(jnp.float32), T, axis=0)
    ref_feat = sum(
        jnp.mean((_ref_ln(cs) - _ref_ln(ct["feat"])) ** 2) for cs, ct in zip(chunks, output_t)
    )
    assert jnp.allclose(out["seq_amg_hint_loss.feat"], ref_feat, rtol=1e-3, atol=1e-5)

    # Reference written exactly as the PyTorch module (teacher concat + permute + permuted
    # mask) to validate the inverse-permutation reformulation used by the wrapper.
    mask_keep = jnp.logical_not(mask_pad.reshape(B, -1).T)           # [N, B]
    mask_perm = jnp.take_along_axis(mask_keep, permute.T, axis=0)    # [N, B]
    for ln_name in layer_names:
        s_n = _ref_ln(student_seq[ln_name])
        t_cat = jnp.concatenate(
            [ts[ln_name].astype(jnp.float32) for ts in teacher_seq], axis=0)
        t_n = jnp.take_along_axis(_ref_ln(t_cat), permute.T[..., None], axis=0)
        diff2 = (s_n - t_n) ** 2
        ref = (diff2 * mask_perm[..., None]).sum() / (mask_perm.sum() * E)
        assert jnp.allclose(out[f"seq_amg_hint_loss.{ln_name}"], ref, rtol=1e-3, atol=1e-5)

    # Extra check: multi-block + ragged-tail kernel path (R=300 -> tb=128, grid=3, masked tail).
    rk = jax.random.split(keys[12], 3)
    R0 = 300
    s0 = jax.random.normal(rk[0], (R0, E), jnp.float32).astype(act_dtype)
    t0 = jax.random.normal(rk[1], (R0, E), jnp.float32).astype(act_dtype)
    w0 = jax.random.bernoulli(rk[2], 0.7, (R0,)).astype(jnp.float32)
    got = jax.block_until_ready(ln_mse_sse(s0, t0, w0, eps=1e-5))
    d0 = _ref_ln(s0) - _ref_ln(t0)
    ref0 = jnp.sum((d0 * d0) * w0[:, None])
    assert jnp.allclose(got, ref0, rtol=1e-3, atol=1e-3), (got, ref0)

    print("KERNEL_OK")
</pallas_src>

<mosaic_0001>
module attributes {stable_mosaic.version = 11 : i64} {
  func.func @_ln_mse_kernel(%arg0: i32, %arg1: memref<64x128xbf16, #tpu.memory_space<vmem>>, %arg2: memref<64x128xbf16, #tpu.memory_space<vmem>>, %arg3: memref<1x64xf32, #tpu.memory_space<vmem>>, %arg4: memref<1x1x128xf32, #tpu.memory_space<vmem>>) attributes {dimension_semantics = [#tpu.dimension_semantics<parallel>], iteration_bounds = array<i64: 1>, scalar_prefetch = 0 : i64, scratch_operands = 0 : i64, tpu.core_type = #tpu.core_type<tc>, window_params = [{transform_indices = @transform_0, window_bounds = array<i64: 64, 128>}, {transform_indices = @transform_1, window_bounds = array<i64: 64, 128>}, {transform_indices = @transform_2, window_bounds = array<i64: 1, 64>}, {transform_indices = @transform_3, window_bounds = array<i64: 1, 1, 128>}]} {
    %c0 = arith.constant 0 : index
    %c0_0 = arith.constant 0 : index
    %0 = vector.load %arg1[%c0, %c0_0] : memref<64x128xbf16, #tpu.memory_space<vmem>>, vector<64x128xbf16>
    %1 = arith.extf %0 : vector<64x128xbf16> to vector<64x128xf32>
    %c0_1 = arith.constant 0 : index
    %c0_2 = arith.constant 0 : index
    %2 = vector.load %arg2[%c0_1, %c0_2] : memref<64x128xbf16, #tpu.memory_space<vmem>>, vector<64x128xbf16>
    %3 = arith.extf %2 : vector<64x128xbf16> to vector<64x128xf32>
    %cst = arith.constant dense<0.000000e+00> : vector<64xf32>
    %4 = vector.multi_reduction <add>, %1, %cst [1] : vector<64x128xf32> to vector<64xf32>
    %5 = vector.shape_cast %4 : vector<64xf32> to vector<64x1xf32>
    %cst_3 = arith.constant 7.812500e-03 : f32
    %6 = vector.broadcast %cst_3 : f32 to vector<64x1xf32>
    %7 = arith.mulf %5, %6 : vector<64x1xf32>
    %8 = vector.broadcast %7 : vector<64x1xf32> to vector<64x128xf32>
    %9 = arith.subf %1, %8 : vector<64x128xf32>
    %10 = arith.mulf %9, %9 : vector<64x128xf32>
    %cst_4 = arith.constant dense<0.000000e+00> : vector<64xf32>
    %11 = vector.multi_reduction <add>, %10, %cst_4 [1] : vector<64x128xf32> to vector<64xf32>
    %12 = vector.shape_cast %11 : vector<64xf32> to vector<64x1xf32>
    %cst_5 = arith.constant 7.812500e-03 : f32
    %13 = vector.broadcast %cst_5 : f32 to vector<64x1xf32>
    %14 = arith.mulf %12, %13 : vector<64x1xf32>
    %cst_6 = arith.constant 9.99999974E-6 : f32
    %15 = vector.broadcast %cst_6 : f32 to vector<64x1xf32>
    %16 = arith.addf %14, %15 : vector<64x1xf32>
    %17 = math.rsqrt %16 : vector<64x1xf32>
    %18 = vector.broadcast %17 : vector<64x1xf32> to vector<64x128xf32>
    %19 = arith.mulf %9, %18 : vector<64x128xf32>
    %cst_7 = arith.constant dense<0.000000e+00> : vector<64xf32>
    %20 = vector.multi_reduction <add>, %3, %cst_7 [1] : vector<64x128xf32> to vector<64xf32>
    %21 = vector.shape_cast %20 : vector<64xf32> to vector<64x1xf32>
    %cst_8 = arith.constant 7.812500e-03 : f32
    %22 = vector.broadcast %cst_8 : f32 to vector<64x1xf32>
    %23 = arith.mulf %21, %22 : vector<64x1xf32>
    %24 = vector.broadcast %23 : vector<64x1xf32> to vector<64x128xf32>
    %25 = arith.subf %3, %24 : vector<64x128xf32>
    %26 = arith.mulf %25, %25 : vector<64x128xf32>
    %cst_9 = arith.constant dense<0.000000e+00> : vector<64xf32>
    %27 = vector.multi_reduction <add>, %26, %cst_9 [1] : vector<64x128xf32> to vector<64xf32>
    %28 = vector.shape_cast %27 : vector<64xf32> to vector<64x1xf32>
    %cst_10 = arith.constant 7.812500e-03 : f32
    %29 = vector.broadcast %cst_10 : f32 to vector<64x1xf32>
    %30 = arith.mulf %28, %29 : vector<64x1xf32>
    %cst_11 = arith.constant 9.99999974E-6 : f32
    %31 = vector.broadcast %cst_11 : f32 to vector<64x1xf32>
    %32 = arith.addf %30, %31 : vector<64x1xf32>
    %33 = math.rsqrt %32 : vector<64x1xf32>
    %34 = vector.broadcast %33 : vector<64x1xf32> to vector<64x128xf32>
    %35 = arith.mulf %25, %34 : vector<64x128xf32>
    %36 = arith.subf %19, %35 : vector<64x128xf32>
    %37 = arith.mulf %36, %36 : vector<64x128xf32>
    %c0_12 = arith.constant 0 : index
    %c0_13 = arith.constant 0 : index
    %38 = vector.load %arg3[%c0_12, %c0_13] : memref<1x64xf32, #tpu.memory_space<vmem>>, vector<1x64xf32>
    %cst_14 = arith.constant dense<0.000000e+00> : vector<1x128xf32>
    %39 = tpu.matmul %38, %37, %cst_14 {dimension_numbers = #tpu.dot_dimension_numbers<[1], [0], [0], [1], [0, 0, 1, 1], [], []>, precision = #tpu.contract_precision<fp32>} : vector<1x64xf32>, vector<64x128xf32>, vector<1x128xf32> -> vector<1x128xf32>
    %40 = vector.shape_cast %39 : vector<1x128xf32> to vector<1x1x128xf32>
    %c0_15 = arith.constant 0 : index
    %c0_16 = arith.constant 0 : index
    %c0_17 = arith.constant 0 : index
    %41 = vector.load %arg4[%c0_15, %c0_16, %c0_17] : memref<1x1x128xf32, #tpu.memory_space<vmem>>, vector<1x1x128xf32>
    tpu.vector_store %arg4[%c0_15, %c0_16, %c0_17], %40 {strides = array<i32>} : memref<1x1x128xf32, #tpu.memory_space<vmem>>, vector<1x1x128xf32>,
    return
  }
  func.func @transform_0(%arg0: i32) -> (i32, i32) {
    %c0_i32 = arith.constant 0 : i32
    %c0_i32_0 = arith.constant 0 : i32
    return %arg0, %c0_i32 : i32, i32
  }
  func.func @transform_1(%arg0: i32) -> (i32, i32) {
    %c0_i32 = arith.constant 0 : i32
    %c0_i32_0 = arith.constant 0 : i32
    return %arg0, %c0_i32 : i32, i32
  }
  func.func @transform_2(%arg0: i32) -> (i32, i32) {
    %c0_i32 = arith.constant 0 : i32
    %c0_i32_0 = arith.constant 0 : i32
    return %c0_i32, %arg0 : i32, i32
  }
  func.func @transform_3(%arg0: i32) -> (i32, i32, i32) {
    %c0_i32 = arith.constant 0 : i32
    %c0_i32_0 = arith.constant 0 : i32
    %c0_i32_1 = arith.constant 0 : i32
    return %arg0, %c0_i32, %c0_i32_0 : i32, i32, i32
  }
}

</mosaic_0001>

<bundles_post_ra>
// kernel: tpu_custom_call.1
= control target key start
LH: loop header
LB: loop body
LE: loop exit
PB: predicated region body
PF: predicated region fallthrough
CT: control target
= control target key end

     0   :  { %8 = vsyncpa [#allocation3], 0  ;;  %s1523_s0 = inlined_call_operand.hbm [shape: bf16[64,128], index: 0, kind: input, shape index: {}]   ;;  %s1524_s1 = inlined_call_operand.hbm [shape: bf16[64,128], index: 1, kind: input, shape index: {}]   ;;  %s1525_s2 = inlined_call_operand.vmem [shape: f32[1,64], index: 2, kind: input, shape index: {}]   ;;  %s1526_s3 = inlined_call_operand.hbm [shape: f32[1,1,128], index: 3, kind: output, shape index: {}]  }
   0x1   :  { %9 = vsyncpa [#allocation6], 0 }
   0x2   :  { %10 = vsyncpa [#allocation4], 0  ;;  %s1225_s12 = smov [#allocation2]   ;;  %s1153_s16 = scalar_lea.hbm %s1523_s0, 512 }
   0x3   :  { %s16_s13 = sshll.u32 %s1225_s12, 4  ;;  %p1154_p0 = scmp.ne.s32.totalorder %s1523_s0, %s1153_s16  ;;  %s17_s13 = int_to_ptr.vmem [resolvable:$true] %s16_s13 }
   0x4   :  { %p1157_p1 = scmp.lt.u32.totalorder %s1153_s16, %s1523_s0 }
   0x6   :  { %p1159_p2 = pnand %p1157_p1, %p1154_p0 }
   0x8   :  { %1162 = shalt.err (!%p1159_p2)
}
   0x9   :  { %s1163_s21 = scalar_lea.vmem %s17_s13, 512  ;;  %p1168_p4 = scmp.lt.s32.totalorder %s17_s13, %s17_s13 }
   0xa   :  { %p1164_p3 = scmp.ne.s32.totalorder %s17_s13, %s1163_s21  ;;  %p1169_p5 = scmp.lt.s32.totalorder %s1163_s21, %s1163_s21 }
   0xc   :  { %p1170_p6 = por %p1169_p5, %p1168_p4 }
   0xe   :  { %p1171_p7 = pnand %p1170_p6, %p1164_p3 }
  0x10   :  { %1174 = shalt.err (!%p1171_p7)
}
  0x11   :  { %s1226_s22 = smov 64   ;;  %s1227_s23 = smov 4  }
  0x12   :  { %22 = dma.hbm_to_vmem [thread:$0]  %s1523_s0, 512, %s17_s13, [#allocation3], %s1226_s22, %s1226_s22, %s1227_s23  }
  0x13   :  { %s1228_s26 = smov [#allocation5]   ;;  %s1175_s30 = scalar_lea.hbm %s1524_s1, 512 }
  0x14   :  { %s28_s27 = sshll.u32 %s1228_s26, 4  ;;  %p1176_p8 = scmp.ne.s32.totalorder %s1524_s1, %s1175_s30  ;;  %s29_s27 = int_to_ptr.vmem [resolvable:$true] %s28_s27 }
  0x15   :  { %p1179_p9 = scmp.lt.u32.totalorder %s1175_s30, %s1524_s1 }
  0x17   :  { %p1181_p10 = pnand %p1179_p9, %p1176_p8 }
  0x19   :  { %1184 = shalt.err (!%p1181_p10)
}
  0x1a   :  { %s1185_s8 = scalar_lea.vmem %s29_s27, 512  ;;  %p1190_p12 = scmp.lt.s32.totalorder %s29_s27, %s29_s27 }
  0x1b   :  { %p1186_p11 = scmp.ne.s32.totalorder %s29_s27, %s1185_s8  ;;  %p1191_p13 = scmp.lt.s32.totalorder %s1185_s8, %s1185_s8 }
  0x1d   :  { %p1192_p0 = por %p1191_p13, %p1190_p12 }
  0x1f   :  { %p1193_p1 = pnand %p1192_p0, %p1186_p11 }
  0x21   :  { %1196 = shalt.err (!%p1193_p1)
}
  0x22   :  { %34 = dma.hbm_to_vmem [thread:$0]  %s1524_s1, 512, %s29_s27, [#allocation6], %s1226_s22, %s1226_s22, %s1227_s23  }
  0x23   :  { %1219 = dma.done.wait [#allocation3], 512  }
  0x24   :  { %1220 = vsyncadd [#allocation3], 4294966784 }
  0x25   :  { %1221 = dma.done.wait [#allocation6], 512  }
  0x26   :  { %1222 = vsyncadd [#allocation6], 4294966784  ;;  %v827_v0 = vld [vmem:[#allocation2] sm:$0xff]   ;;  %v858_v6 = vld [vmem:[#allocation2 + $0x8] sm:$0xff]   ;;  %vm1230_vm0 = vmmov 0   ;;  %vm268_vm1 = vcmask 523264  }
  0x27   :  { %v843_v1 = vld [vmem:[#allocation5] sm:$0xff]   ;;  %v828_v2 = vunpack.c.l.bf16 %v827_v0  ;;  %v829_v4 = vunpack.c.h.bf16 %v827_v0  ;;  %v832_v7 = vunpack.c.l.bf16 %v858_v6  ;;  %v833_v8 = vunpack.c.h.bf16 %v858_v6  ;;  %v861_v9 = vld [vmem:[#allocation5 + $0x8] sm:$0xff]   ;;  %v1277_v12 = vld [vmem:[#allocation2 + $0x10] sm:$0xff]  }
  0x28   :  { %v844_v3 = vunpack.c.l.bf16 %v843_v1  ;;  %v845_v5 = vunpack.c.h.bf16 %v843_v1  ;;  %v848_v10 = vunpack.c.l.bf16 %v861_v9  ;;  %v849_v11 = vunpack.c.h.bf16 %v861_v9  ;;  %v1281_v15 = vld [vmem:[#allocation5 + $0x10] sm:$0xff]   ;;  %v1285_v18 = vld [vmem:[#allocation2 + $0x18] sm:$0xff]  }
  0x29   :  { %75 = vadd.xlane.f32.xlu0 %v828_v2  ;;  %v836_v13 = vunpack.c.l.bf16 %v1277_v12  ;;  %v837_v14 = vunpack.c.h.bf16 %v1277_v12  ;;  %v852_v16 = vunpack.c.l.bf16 %v1281_v15  ;;  %v853_v17 = vunpack.c.h.bf16 %v1281_v15  ;;  %v1293_v21 = vld [vmem:[#allocation5 + $0x18] sm:$0xff]  }
  0x2a   :  { %163 = vadd.xlane.f32.xlu1 %v844_v3  ;;  %v840_v19 = vunpack.c.l.bf16 %v1285_v18  ;;  %v841_v20 = vunpack.c.h.bf16 %v1285_v18  ;;  %v856_v22 = vunpack.c.l.bf16 %v1293_v21  ;;  %v857_v23 = vunpack.c.h.bf16 %v1293_v21 }
  0x2b   :  { %v1231_v21 = vmov 0.0  }
  0x2c   :  { %934 = vmatprep.mubr.msk.f32.mxu1 %vm1230_vm0, %v1231_v21  ;;  %991 = vmatprep.mubr.msk.f32.mxu0 %vm1230_vm0, %v1231_v21 }
  0x2d   :  { %77 = vadd.xlane.f32.xlu0 %v829_v4 }
  0x2e   :  { %165 = vadd.xlane.f32.xlu1 %v845_v5 }
  0x31   :  { %79 = vadd.xlane.f32.xlu0 %v832_v7 }
  0x32   :  { %81 = vadd.xlane.f32.xlu1 %v833_v8 }
  0x35   :  { %167 = vadd.xlane.f32.xlu0 %v848_v10 }
  0x36   :  { %169 = vadd.xlane.f32.xlu1 %v849_v11 }
  0x39   :  { %83 = vadd.xlane.f32.xlu0 %v836_v13 }
  0x3a   :  { %85 = vadd.xlane.f32.xlu1 %v837_v14 }
  0x3d   :  { %171 = vadd.xlane.f32.xlu0 %v852_v16 }
  0x3e   :  { %173 = vadd.xlane.f32.xlu1 %v853_v17 }
  0x41   :  { %87 = vadd.xlane.f32.xlu0 %v840_v19 }
  0x42   :  { %89 = vadd.xlane.f32.xlu1 %v841_v20 }
  0x45   :  { %175 = vadd.xlane.f32.xlu0 %v856_v22 }
  0x46   :  { %177 = vadd.xlane.f32.xlu1 %v857_v23 }
  0xb6   :  { %v76_v24 = vpop.xlane.xlu0 %75 }
  0xb7   :  { %v164_v25 = vpop.xlane.xlu1 %163  ;;  %v91_v26 = vmul.f32 0.0078125, %v76_v24 }
  0xb8   :  { %v179_v27 = vmul.f32 0.0078125, %v164_v25 }
  0xb9   :  { %v1305_v28 = vsub.f32 %v828_v2, %v91_v26 }
  0xba   :  { %v1307_v29 = vsub.f32 %v844_v3, %v179_v27  ;;  %v78_v30 = vpop.xlane.xlu0 %77 }
  0xbb   :  { %v166_v31 = vpop.xlane.xlu1 %165  ;;  %v92_v32 = vmul.f32 0.0078125, %v78_v30  ;;  %v107_v33 = vmul.f32 %v1305_v28, %v1305_v28 }
  0xbc   :  { %v180_v34 = vmul.f32 0.0078125, %v166_v31  ;;  %v195_v37 = vmul.f32 %v1307_v29, %v1307_v29 }
  0xbd   :  { %v1311_v35 = vsub.f32 %v829_v4, %v92_v32  ;;  %115 = vadd.xlane.f32.xlu0 %v107_v33 }
  0xbe   :  { %v1313_v36 = vsub.f32 %v845_v5, %v180_v34  ;;  %v80_v38 = vpop.xlane.xlu0 %79 }
  0xbf   :  { %v82_v39 = vpop.xlane.xlu1 %81  ;;  %v93_v40 = vmul.f32 0.0078125, %v80_v38  ;;  %v108_v41 = vmul.f32 %v1311_v35, %v1311_v35 }
  0xc0   :  { %v94_v42 = vmul.f32 0.0078125, %v82_v39  ;;  %v196_v45 = vmul.f32 %v1313_v36, %v1313_v36 }
  0xc1   :  { %v1319_v43 = vsub.f32 %v832_v7, %v93_v40  ;;  %203 = vadd.xlane.f32.xlu0 %v195_v37  ;;  %117 = vadd.xlane.f32.xlu1 %v108_v41 }
  0xc2   :  { %v1321_v44 = vsub.f32 %v833_v8, %v94_v42  ;;  %v168_v46 = vpop.xlane.xlu0 %167 }
  0xc3   :  { %v170_v47 = vpop.xlane.xlu1 %169  ;;  %v181_v48 = vmul.f32 0.0078125, %v168_v46  ;;  %v109_v49 = vmul.f32 %v1319_v43, %v1319_v43 }
  0xc4   :  { %v182_v50 = vmul.f32 0.0078125, %v170_v47  ;;  %v110_v53 = vmul.f32 %v1321_v44, %v1321_v44 }
  0xc5   :  { %v1327_v51 = vsub.f32 %v848_v10, %v181_v48  ;;  %205 = vadd.xlane.f32.xlu1 %v196_v45  ;;  %119 = vadd.xlane.f32.xlu0 %v109_v49 }
  0xc6   :  { %v1329_v52 = vsub.f32 %v849_v11, %v182_v50  ;;  %v84_v54 = vpop.xlane.xlu0 %83 }
  0xc7   :  { %v86_v55 = vpop.xlane.xlu1 %85  ;;  %v95_v56 = vmul.f32 0.0078125, %v84_v54  ;;  %v197_v57 = vmul.f32 %v1327_v51, %v1327_v51 }
  0xc8   :  { %v96_v58 = vmul.f32 0.0078125, %v86_v55  ;;  %v198_v61 = vmul.f32 %v1329_v52, %v1329_v52 }
  0xc9   :  { %v1335_v59 = vsub.f32 %v836_v13, %v95_v56  ;;  %121 = vadd.xlane.f32.xlu1 %v110_v53  ;;  %207 = vadd.xlane.f32.xlu0 %v197_v57 }
  0xca   :  { %v1337_v60 = vsub.f32 %v837_v14, %v96_v58  ;;  %v172_v62 = vpop.xlane.xlu0 %171 }
  0xcb   :  { %v174_v63 = vpop.xlane.xlu1 %173  ;;  %v183_v0 = vmul.f32 0.0078125, %v172_v62  ;;  %v111_v1 = vmul.f32 %v1335_v59, %v1335_v59 }
  0xcc   :  { %v184_v2 = vmul.f32 0.0078125, %v174_v63  ;;  %v112_v5 = vmul.f32 %v1337_v60, %v1337_v60 }
  0xcd   :  { %v1345_v3 = vsub.f32 %v852_v16, %v183_v0  ;;  %209 = vadd.xlane.f32.xlu1 %v198_v61  ;;  %123 = vadd.xlane.f32.xlu0 %v111_v1 }
  0xce   :  { %v1349_v4 = vsub.f32 %v853_v17, %v184_v2  ;;  %v88_v6 = vpop.xlane.xlu0 %87 }
  0xcf   :  { %v90_v7 = vpop.xlane.xlu1 %89  ;;  %v97_v8 = vmul.f32 0.0078125, %v88_v6  ;;  %v199_v9 = vmul.f32 %v1345_v3, %v1345_v3 }
  0xd0   :  { %v98_v10 = vmul.f32 0.0078125, %v90_v7  ;;  %v200_v13 = vmul.f32 %v1349_v4, %v1349_v4 }
  0xd1   :  { %v1357_v11 = vsub.f32 %v840_v19, %v97_v8  ;;  %125 = vadd.xlane.f32.xlu1 %v112_v5  ;;  %211 = vadd.xlane.f32.xlu0 %v199_v9 }
  0xd2   :  { %v1361_v12 = vsub.f32 %v841_v20, %v98_v10  ;;  %v176_v14 = vpop.xlane.xlu0 %175 }
  0xd3   :  { %v178_v15 = vpop.xlane.xlu1 %177  ;;  %v185_v16 = vmul.f32 0.0078125, %v176_v14  ;;  %v113_v17 = vmul.f32 %v1357_v11, %v1357_v11 }
  0xd4   :  { %v186_v24 = vmul.f32 0.0078125, %v178_v15  ;;  %v114_v20 = vmul.f32 %v1361_v12, %v1361_v12 }
  0xd5   :  { %v1369_v19 = vsub.f32 %v856_v22, %v185_v16  ;;  %213 = vadd.xlane.f32.xlu1 %v200_v13  ;;  %127 = vadd.xlane.f32.xlu0 %v113_v17  ;;  %v1229_v22 = vmov 0.0|0.0  }
  0xd6   :  { %v1373_v18 = vsub.f32 %v857_v23, %v186_v24  ;;  %1032 = vmatprep.subr.bf16.mxu1 %v1229_v22  ;;  %1068 = vmatprep.subr.bf16.mxu0 %v1229_v22 }
  0xd7   :  { %v201_v25 = vmul.f32 %v1369_v19, %v1369_v19 }
  0xd8   :  { %v202_v26 = vmul.f32 %v1373_v18, %v1373_v18 }
  0xd9   :  { %129 = vadd.xlane.f32.xlu1 %v114_v20  ;;  %215 = vadd.xlane.f32.xlu0 %v201_v25 }
  0xdd   :  { %217 = vadd.xlane.f32.xlu1 %v202_v26 }
 0x14a   :  { %v116_v23 = vpop.xlane.xlu0 %115 }
 0x14b   :  { %v131_v27 = vmul.f32 0.0078125, %v116_v23 }
 0x14d   :  { %v139_v30 = vadd.f32 1e-05, %v131_v27 }
 0x14e   :  { %v118_v31 = vpop.xlane.xlu1 %117  ;;  %v204_v32 = vpop.xlane.xlu0 %203 }
 0x14f   :  { %v132_v33 = vmul.f32 0.0078125, %v118_v31  ;;  %v219_v34 = vmul.f32 0.0078125, %v204_v32  ;;  %1121 = vrsqrt.f32 %v139_v30 }
 0x151   :  { %v140_v37 = vadd.f32 1e-05, %v132_v33  ;;  %v227_v38 = vadd.f32 1e-05, %v219_v34 }
 0x152   :  { %v206_v39 = vpop.xlane.xlu1 %205  ;;  %v120_v40 = vpop.xlane.xlu0 %119 }
 0x153   :  { %v220_v41 = vmul.f32 0.0078125, %v206_v39  ;;  %v133_v42 = vmul.f32 0.0078125, %v120_v40  ;;  %1123 = vrsqrt.f32 %v227_v38 }
 0x154   :  { %1125 = vrsqrt.f32 %v140_v37 }
 0x155   :  { %v228_v45 = vadd.f32 1e-05, %v220_v41  ;;  %v141_v46 = vadd.f32 1e-05, %v133_v42 }
 0x156   :  { %v122_v47 = vpop.xlane.xlu1 %121  ;;  %v208_v48 = vpop.xlane.xlu0 %207 }
 0x157   :  { %1127 = vrsqrt.f32 %v228_v45  ;;  %v134_v49 = vmul.f32 0.0078125, %v122_v47  ;;  %v221_v50 = vmul.f32 0.0078125, %v208_v48 }
 0x158   :  { %1129 = vrsqrt.f32 %v141_v46 }
 0x159   :  { %v142_v53 = vadd.f32 1e-05, %v134_v49  ;;  %v229_v54 = vadd.f32 1e-05, %v221_v50  ;;  %v1122_v57 = vpop.eup %1121 }
 0x15a   :  { %v210_v55 = vpop.xlane.xlu1 %209  ;;  %v124_v56 = vpop.xlane.xlu0 %123  ;;  %v155_v5 = vmul.f32 %v1122_v57, %v1305_v28 }
 0x15b   :  { %1131 = vrsqrt.f32 %v142_v53  ;;  %v222_v58 = vmul.f32 0.0078125, %v210_v55  ;;  %v135_v61 = vmul.f32 0.0078125, %v124_v56 }
 0x15c   :  { %1133 = vrsqrt.f32 %v229_v54 }
 0x15d   :  { %v230_v62 = vadd.f32 1e-05, %v222_v58  ;;  %v1124_v63 = vpop.eup %1123  ;;  %v143_v0 = vadd.f32 1e-05, %v135_v61 }
 0x15e   :  { %v126_v1 = vpop.xlane.xlu1 %125  ;;  %v212_v2 = vpop.xlane.xlu0 %211  ;;  %v243_v9 = vmul.f32 %v1124_v63, %v1307_v29 }
 0x15f   :  { %v1126_v6 = vpop.eup %1125  ;;  %1135 = vrsqrt.f32 %v230_v62  ;;  %v136_v7 = vmul.f32 0.0078125, %v126_v1  ;;  %v223_v8 = vmul.f32 0.0078125, %v212_v2 }
 0x160   :  { %v251_v15 = vsub.f32 %v155_v5, %v243_v9  ;;  %1137 = vrsqrt.f32 %v143_v0  ;;  %v156_v24 = vmul.f32 %v1126_v6, %v1311_v35 }
 0x161   :  { %v1128_v10 = vpop.eup %1127  ;;  %v144_v13 = vadd.f32 1e-05, %v136_v7  ;;  %v231_v14 = vadd.f32 1e-05, %v223_v8 }
 0x162   :  { %v214_v16 = vpop.xlane.xlu1 %213  ;;  %v128_v17 = vpop.xlane.xlu0 %127  ;;  %v244_v20 = vmul.f32 %v1128_v10, %v1313_v36  ;;  %v1391_v27 = vmul.f32 %v251_v15, %v251_v15 }
 0x163   :  { %v224_v25 = vmul.f32 0.0078125, %v214_v16  ;;  %v137_v26 = vmul.f32 0.0078125, %v128_v17  ;;  %v1130_v28 = vpop.eup %1129  ;;  %1139 = vrsqrt.f32 %v231_v14 }
 0x164   :  { %v252_v23 = vsub.f32 %v156_v24, %v244_v20  ;;  %1141 = vrsqrt.f32 %v144_v13  ;;  %v273_v36 = vand.u32 4294901760, %v1391_v27  ;;  %v157_v40 = vmul.f32 %v1130_v28, %v1319_v43 }
 0x165   :  { %v1132_v30 = vpop.eup %1131  ;;  %v232_v29 = vadd.f32 1e-05, %v224_v25  ;;  %v145_v32 = vadd.f32 1e-05, %v137_v26 }
 0x166   :  { %v1134_v31 = vpop.eup %1133  ;;  %v130_v33 = vpop.xlane.xlu1 %129  ;;  %v260_v37 = vmul.f32 %v252_v23, %v252_v23  ;;  %v158_v47 = vmul.f32 %v1132_v30, %v1321_v44  ;;  %v267_v44 = vld [vmem:[%s1525_s2] sm:$0x1]  ;;  %s1232_s2 = smov [#allocation7]  }
 0x167   :  { %v216_v34 = vpop.xlane.xlu0 %215  ;;  %1143 = vrsqrt.f32 %v232_v29  ;;  %v138_v38 = vmul.f32 0.0078125, %v130_v33  ;;  %v245_v41 = vmul.f32 %v1134_v31, %v1327_v51  ;;  %v270_v1 = vsel %vm268_vm1, %v267_v44, 0  ;;  %s816_s11 = sshll.u32 %s1232_s2, 4  ;;  %s817_s11 = int_to_ptr.vmem [resolvable:$true] %s816_s11 }
 0x168   :  { %v225_v35 = vmul.f32 0.0078125, %v216_v34  ;;  %v276_v39 = vand.u32 4294901760, %v260_v37  ;;  %1145 = vrsqrt.f32 %v145_v32  ;;  %v1413_v9 = vand.u32 4294901760, %v270_v1  ;;  %s1197_s12 = scalar_lea.vmem %s817_s11, 16  ;;  %s1201_s13 = scalar_lea.vmem %s817_s11, 32 }
 0x169   :  { %v1136_v42 = vpop.eup %1135  ;;  %v146_v45 = vadd.f32 1e-05, %v138_v38  ;;  %v253_v53 = vsub.f32 %v157_v40, %v245_v41  ;;  %p1198_p2 = scmp.ne.s32.totalorder %s817_s11, %s1197_s12  ;;  %p1202_p3 = scmp.lt.s32.totalorder %s817_s11, %s817_s11 }
 0x16a   :  { %v233_v46 = vadd.f32 1e-05, %v225_v35  ;;  %v218_v48 = vpop.xlane.xlu1 %217  ;;  %v1397_v49 = vpack.c.bf16 %v276_v39, %v273_v36  ;;  %v246_v50 = vmul.f32 %v1136_v42, %v1329_v52  ;;  %v1138_v55 = vpop.eup %1137  ;;  %v1417_v13 = vsub.f32 %v260_v37, %v276_v39  ;;  %p1203_p4 = scmp.lt.s32.totalorder %s1201_s13, %s1197_s12 }
 0x16b   :  { %v226_v54 = vmul.f32 0.0078125, %v218_v48  ;;  %v261_v51 = vmul.f32 %v253_v53, %v253_v53  ;;  %v159_v61 = vmul.f32 %v1138_v55, %v1335_v59  ;;  %v1427_v24 = vsub.f32 %v270_v1, %v1413_v9 }
 0x16c   :  { %1147 = vrsqrt.f32 %v233_v46  ;;  %1034 = vmatpush3.bf16.msra.mxu1 %v1397_v49  ;;  %1070 = vmatpush3.bf16.msra.mxu0 %v1397_v49  ;;  %v254_v43 = vsub.f32 %v158_v47, %v246_v50  ;;  %v365_v23 = vand.u32 4294901760, %v1417_v13  ;;  %p1204_p5 = por %p1203_p4, %p1202_p3 }
 0x16d   :  { %1149 = vrsqrt.f32 %v146_v45  ;;  %v234_v56 = vadd.f32 1e-05, %v226_v54  ;;  %1035 = vmatprep.subr.bf16.mxu1 %v1229_v22  ;;  %1071 = vmatprep.subr.bf16.mxu0 %v1229_v22  ;;  %v1140_v52 = vpop.eup %1139  ;;  %v279_v63 = vand.u32 4294901760, %v261_v51 }
 0x16e   :  { %v262_v57 = vmul.f32 %v254_v43, %v254_v43  ;;  %v1142_v58 = vpop.eup %1141  ;;  %v247_v62 = vmul.f32 %v1140_v52, %v1345_v3  ;;  %p1205_p6 = pnand %p1204_p5, %p1198_p2 }
 0x16f   :  { %1151 = vrsqrt.f32 %v234_v56  ;;  %v160_v7 = vmul.f32 %v1142_v58, %v1337_v60  ;;  %v1438_v32 = vsub.f32 %v261_v51, %v279_v63 }
 0x170   :  { %v282_v0 = vand.u32 4294901760, %v262_v57  ;;  %v255_v5 = vsub.f32 %v159_v61, %v247_v62 }
 0x171   :  { %v1144_v2 = vpop.eup %1143  ;;  %v372_v42 = vand.u32 4294901760, %v1438_v32 }
 0x172   :  { %v1409_v6 = vpack.c.bf16 %v282_v0, %v279_v63  ;;  %v248_v8 = vmul.f32 %v1144_v2, %v1349_v4  ;;  %v1146_v10 = vpop.eup %1145  ;;  %v263_v3 = vmul.f32 %v255_v5, %v255_v5  ;;  %v1422_v4 = vsub.f32 %v1391_v27, %v273_v36 }
 0x173   :  { %v161_v16 = vmul.f32 %v1146_v10, %v1357_v11  ;;  %v1430_v30 = vsub.f32 %v262_v57, %v282_v0  ;;  %v347_v11 = vand.u32 4294901760, %v1427_v24  ;;  %v373_v43 = vsub.f32 %v1438_v32, %v372_v42 }
 0x174   :  { %1037 = vmatpush3.bf16.msra.mxu1 %v1409_v6  ;;  %1073 = vmatpush3.bf16.msra.mxu0 %v1409_v6  ;;  %v256_v59 = vsub.f32 %v160_v7, %v248_v8  ;;  %v285_v20 = vand.u32 4294901760, %v263_v3 }
 0x175   :  { %1038 = vmatprep.subr.bf16.mxu1 %v1229_v22  ;;  %1074 = vmatprep.subr.bf16.mxu0 %v1229_v22  ;;  %v379_v38 = vand.u32 4294901760, %v1430_v30  ;;  %v348_v35 = vsub.f32 %v1427_v24, %v347_v11  ;;  %v374_v61 = vand.u32 4294901760, %v373_v43 }
 0x176   :  { %v1148_v14 = vpop.eup %1147  ;;  %v264_v15 = vmul.f32 %v256_v59, %v256_v59  ;;  %v1450_v39 = vsub.f32 %v263_v3, %v285_v20 }
 0x177   :  { %v1150_v60 = vpop.eup %1149  ;;  %v249_v17 = vmul.f32 %v1148_v14, %v1369_v19  ;;  %v358_v19 = vand.u32 4294901760, %v1422_v4  ;;  %v380_v48 = vsub.f32 %v1430_v30, %v379_v38  ;;  %v349_v53 = vand.u32 4294901760, %v348_v35 }
 0x178   :  { %v288_v25 = vand.u32 4294901760, %v264_v15  ;;  %v162_v27 = vmul.f32 %v1150_v60, %v1361_v12  ;;  %v366_v12 = vsub.f32 %v1417_v13, %v365_v23  ;;  %v386_v51 = vand.u32 4294901760, %v1450_v39 }
 0x179   :  { %v1152_v26 = vpop.eup %1151  ;;  %v257_v28 = vsub.f32 %v161_v16, %v249_v17  ;;  %v359_v36 = vsub.f32 %v1422_v4, %v358_v19  ;;  %v1081_v56 = vpack.c.bf16 %v365_v23, %v358_v19  ;;  %v381_v52 = vand.u32 4294901760, %v380_v48 }
 0x17a   :  { %v1432_v29 = vpack.c.bf16 %v288_v25, %v285_v20  ;;  %v250_v31 = vmul.f32 %v1152_v26, %v1373_v18  ;;  %v1445_v37 = vsub.f32 %v264_v15, %v288_v25  ;;  %v367_v45 = vand.u32 4294901760, %v366_v12 }
 0x17b   :  { %v265_v34 = vmul.f32 %v257_v28, %v257_v28  ;;  %v360_v55 = vand.u32 4294901760, %v359_v36  ;;  %v387_v62 = vsub.f32 %v1450_v39, %v386_v51  ;;  %v1048_v0 = vpack.c.bf16 %v381_v52, %v374_v61 }
 0x17c   :  { %1040 = vmatpush3.bf16.msra.mxu1 %v1432_v29  ;;  %1076 = vmatpush3.bf16.msra.mxu0 %v1432_v29  ;;  %v258_v33 = vsub.f32 %v162_v27, %v250_v31  ;;  %v393_v50 = vand.u32 4294901760, %v1445_v37  ;;  %v1084_v1 = vpack.c.bf16 %v379_v38, %v372_v42  ;;  %v1057_v16 = vpack.c.bf16 %v1417_v13, %v1422_v4 }
 0x17d   :  { %1041 = vmatprep.subr.bf16.mxu1 %v1229_v22  ;;  %1077 = vmatprep.subr.bf16.mxu0 %v1229_v22  ;;  %v291_v40 = vand.u32 4294901760, %v265_v34  ;;  %v1045_v44 = vpack.c.bf16 %v367_v45, %v360_v55  ;;  %v388_v7 = vand.u32 4294901760, %v387_v62  ;;  %v1060_v17 = vpack.c.bf16 %v1430_v30, %v1438_v32 }
 0x17e   :  { %v266_v18 = vmul.f32 %v258_v33, %v258_v33  ;;  %v394_v57 = vsub.f32 %v1445_v37, %v393_v50  ;;  %v1087_v59 = vpack.c.bf16 %v393_v50, %v386_v51 }
 0x17f   :  { %v1460_v54 = vsub.f32 %v265_v34, %v291_v40 }
 0x180   :  { %v294_v41 = vand.u32 4294901760, %v266_v18  ;;  %v395_v2 = vand.u32 4294901760, %v394_v57 }
 0x181   :  { %v400_v63 = vand.u32 4294901760, %v1460_v54 }
 0x182   :  { %v1453_v46 = vpack.c.bf16 %v294_v41, %v291_v40  ;;  %v1455_v47 = vsub.f32 %v266_v18, %v294_v41  ;;  %v1051_v10 = vpack.c.bf16 %v395_v2, %v388_v7 }
 0x183   :  { %v401_v8 = vsub.f32 %v1460_v54, %v400_v63 }
 0x184   :  { %1043 = vmatpush3.bf16.msra.mxu1 %v1453_v46  ;;  %1079 = vmatpush3.bf16.msra.mxu0 %v1453_v46  ;;  %v407_v58 = vand.u32 4294901760, %v1455_v47 }
 0x185   :  { %1044 = vmatprep.subr.bf16.mxu1 %v1229_v22  ;;  %1080 = vmatprep.subr.bf16.mxu0 %v1229_v22  ;;  %v402_v14 = vand.u32 4294901760, %v401_v8 }
 0x186   :  { %v408_v5 = vsub.f32 %v1455_v47, %v407_v58  ;;  %v1090_v60 = vpack.c.bf16 %v407_v58, %v400_v63 }
 0x187   :  { %935 = vmatmul.mubr.f32.vlgmr.msra.gmra.mrb[0].mxu1 %v349_v53  ;;  %992 = vmatmul.mubr.f32.vlgmr.msra.gmra.mrb[0].mxu0 %v347_v11 }
 0x188   :  { %1046 = vmatpush3.bf16.msra.mxu1 %v1045_v44  ;;  %1082 = vmatpush3.bf16.msra.mxu0 %v1081_v56  ;;  %v409_v3 = vand.u32 4294901760, %v408_v5 }
 0x189   :  { %1047 = vmatprep.subr.bf16.mxu1 %v1229_v22  ;;  %1083 = vmatprep.subr.bf16.mxu0 %v1229_v22 }
 0x18a   :  { %953 = vmatprep.mubr.msk.f32.mxu1 %vm1230_vm0, %v1231_v21  ;;  %1010 = vmatprep.mubr.msk.f32.mxu0 %vm1230_vm0, %v1231_v21  ;;  %v1054_v15 = vpack.c.bf16 %v409_v3, %v402_v14 }
 0x18c   :  { %1049 = vmatpush3.bf16.msra.mxu1 %v1048_v0  ;;  %1085 = vmatpush3.bf16.msra.mxu0 %v1084_v1 }
 0x18d   :  { %1050 = vmatprep.subr.bf16.mxu1 %v1229_v22  ;;  %1086 = vmatprep.subr.bf16.mxu0 %v1229_v22 }
 0x190   :  { %1052 = vmatpush3.bf16.msra.mxu1 %v1051_v10  ;;  %1088 = vmatpush3.bf16.msra.mxu0 %v1087_v59 }
 0x191   :  { %1053 = vmatprep.subr.bf16.mxu1 %v1229_v22  ;;  %1089 = vmatprep.subr.bf16.mxu0 %v1229_v22 }
 0x194   :  { %1055 = vmatpush3.bf16.msra.mxu1 %v1054_v15  ;;  %1091 = vmatpush3.bf16.msra.mxu0 %v1090_v60 }
 0x195   :  { %1056 = vmatprep.subr.bf16.mxu1 %v1229_v22  ;;  %1092 = vmatprep.subr.bf16.mxu0 %v1229_v22 }
 0x197   :  { %954 = vmatmul.mubr.f32.vlgmr.msra.gmra.mrb[0].mxu1 %v1413_v9  ;;  %1011 = vmatmul.mubr.f32.vlgmr.msra.gmra.mrb[0].mxu0 %v1413_v9 }
 0x198   :  { %1058 = vmatpush3.bf16.msra.mxu1 %v1057_v16  ;;  %1094 = vmatpush3.bf16.msra.mxu0 %v1397_v49  ;;  %v1063_v49 = vpack.c.bf16 %v1445_v37, %v1450_v39 }
 0x199   :  { %1059 = vmatprep.subr.bf16.mxu1 %v1229_v22  ;;  %1095 = vmatprep.subr.bf16.mxu0 %v1229_v22 }
 0x19a   :  { %972 = vmatprep.mubr.msk.f32.mxu1 %vm1230_vm0, %v1231_v21  ;;  %1029 = vmatprep.mubr.msk.f32.mxu0 %vm1230_vm0, %v1231_v21  ;;  %v1066_v21 = vpack.c.bf16 %v1455_v47, %v1460_v54 }
 0x19c   :  { %1061 = vmatpush3.bf16.msra.mxu1 %v1060_v17  ;;  %1097 = vmatpush3.bf16.msra.mxu0 %v1409_v6 }
 0x19d   :  { %1062 = vmatprep.subr.bf16.mxu1 %v1229_v22  ;;  %1098 = vmatprep.subr.bf16.mxu0 %v1229_v22 }
 0x1a0   :  { %1064 = vmatpush3.bf16.msra.mxu1 %v1063_v49  ;;  %1100 = vmatpush3.bf16.msra.mxu0 %v1432_v29 }
 0x1a1   :  { %1065 = vmatprep.subr.bf16.mxu1 %v1229_v22  ;;  %1101 = vmatprep.subr.bf16.mxu0 %v1229_v22 }
 0x1a4   :  { %1067 = vmatpush3.bf16.msra.mxu1 %v1066_v21  ;;  %1103 = vmatpush3.bf16.msra.mxu0 %v1453_v46 }
 0x1a7   :  { %973 = vmatmul.mubr.f32.vlgmr.msra.gmra.mrb[0].mxu1 %v1427_v24  ;;  %1030 = vmatmul.mubr.f32.vlgmr.msra.gmra.mrb[0].mxu0 %v1413_v9 }
 0x27a   :  { %v550_v6 = vpop.f32.mrb[0].mxu1  ;;  %v805_v13 = vpop.f32.mrb[0].mxu0 }
 0x27b   :  { %v1104_v4 = vadd.f32 %v805_v13, %v550_v6  ;;  %v974_v20 = vpop.f32.mrb[1].mxu1  ;;  %v1031_v25 = vpop.f32.mrb[1].mxu0 }
 0x27d   :  { %809 = vst [vmem:[#allocation7] sm:$0x1] %v1104_v4 }
 0x27e   :  { %1208 = shalt.err (!%p1205_p6)
}
 0x27f   :  { %s1209_s16 = scalar_lea.hbm %s1526_s3, 16 }
 0x280   :  { %p1210_p7 = scmp.ne.s32.totalorder %s1526_s3, %s1209_s16  ;;  %p1213_p8 = scmp.lt.u32.totalorder %s1209_s16, %s1526_s3 }
 0x282   :  { %p1215_p9 = pnand %p1213_p8, %p1210_p7 }
 0x284   :  { %1218 = shalt.err (!%p1215_p9)
}
 0x285   :  { %819 = dma.vmem_to_hbm [thread:$0]  %s817_s11, 16, %s1526_s3, [#allocation4]  }
 0x286   :  { %1223 = dma.done.wait [#allocation4], 16  }
 0x287   :  { %1224 = vsyncadd [#allocation4], 4294967280 }
 0x288   :  { %823 = vsyncpa [#allocation3], 1 }
 0x289   :  { %824 = vsyncpa [#allocation6], 1 }
 0x28a   :  { %825 = vsyncpa [#allocation4], 1 }

</bundles_post_ra>
